<compile_context>
chip_gen: v7x
topology: tpu7x:2x2x1
jax: 0.10.0
libtpu: 0.0.40
codegen_flags: <defaults>
</compile_context>

<pallas_src>
import jax
import jax.numpy as jnp
from jax.experimental import pallas as pl
from jax.experimental.pallas import tpu as pltpu


def _round_up(x, m):
    return ((x + m - 1) // m) * m


def _detect_tpu():
    """Best-effort (vmem_capacity_bytes, num_tensorcores) query."""
    vmem_cap = 64 << 20   # conservative fallback: fits every generation (v7x)
    num_cores = 1
    try:
        info = pltpu.get_tpu_info()
        vmem_cap = int(getattr(info, "vmem_capacity_bytes", vmem_cap)) or vmem_cap
        for name in ("num_cores", "num_tensorcores", "tensorcore_count",
                     "cores_per_chip"):
            v = getattr(info, name, None)
            if v:
                num_cores = int(v)
                break
    except Exception:
        pass
    return vmem_cap, max(1, num_cores)


def _label_smoothing_loss_kernel(nrows_ref, pred_ref, target_ref, out_ref, acc_ref):
    c = pl.program_id(0)          # per-core slice (parallel axis)
    i = pl.program_id(1)          # reduction over batch tiles within the slice
    tb = pred_ref.shape[0]

    @pl.when(i == 0)
    def _():
        acc_ref[...] = jnp.zeros_like(acc_ref)

    x = pred_ref[...].astype(jnp.float32)      # (tb, C)
    t = target_ref[...].astype(jnp.float32)    # (tb, C)

    # Stable log_softmax, folded:
    #   logp = x - m - lse  =>  sum(-t * logp) = (m + lse) * sum(t) - sum(t * x)
    m = jnp.max(x, axis=-1, keepdims=True)                            # (tb, 1)
    lse = jnp.log(jnp.sum(jnp.exp(x - m), axis=-1, keepdims=True))    # (tb, 1)
    sum_t = jnp.sum(t, axis=-1, keepdims=True)                        # (tb, 1)
    sum_tx = jnp.sum(t * x, axis=-1, keepdims=True)                   # (tb, 1)
    partial = (m + lse) * sum_t - sum_tx                              # (tb, 1)

    # Mask rows past the true batch size (partial edge blocks read unspecified
    # VMEM padding; jnp.where drops any NaN/Inf those rows may produce).
    row0 = (c * pl.num_programs(1) + i) * tb
    rows = row0 + jax.lax.broadcasted_iota(jnp.int32, (tb, 1), 0)
    partial = jnp.where(rows < nrows_ref[0], partial, 0.0)

    # Per-step scalar accumulate into a (1,1) f32 VMEM scratch.
    acc_ref[...] += jnp.sum(partial, axis=0, keepdims=True)

    # Only the final step of this slice touches SMEM.
    @pl.when(i == pl.num_programs(1) - 1)
    def _():
        out_ref[0, 0] = jnp.sum(acc_ref[...])


def label_smoothing_loss(pred, target, *, tb=None, num_parallel=None):
    """pred, target: [B, C] (f32 or bf16). Returns scalar float32 loss."""
    assert pred.ndim == 2 and pred.shape == target.shape
    B, C = pred.shape

    ip = jnp.dtype(pred.dtype).itemsize
    it = jnp.dtype(target.dtype).itemsize
    bytes_per_row = C * (ip + it)

    def _row_align(itemsize):
        return {4: 8, 2: 16, 1: 32}.get(itemsize, 8)

    row_align = max(_row_align(ip), _row_align(it))

    vmem_cap, detected_cores = _detect_tpu()
    vmem_budget = (vmem_cap * 3) // 4               # ~75% of per-core VMEM
    stream_target = max(4 << 20, min(16 << 20, vmem_cap // 8))

    if num_parallel is None:
        num_parallel = detected_cores               # 1 on v5e/v6e, 2 on v7x
    num_parallel = max(1, int(num_parallel))

    if tb is None:
        tb = stream_target // max(bytes_per_row, 1)
    tb = min(int(tb), 8192, _round_up(pl.cdiv(B, num_parallel), row_align))
    tb = _round_up(max(tb, row_align), row_align)

    # Shrink tb until double-buffered input blocks + ~6 f32 temporaries fit.
    per_row_vmem = 2 * bytes_per_row + 6 * C * 4
    while tb > row_align and tb * per_row_vmem + (2 << 20) > vmem_budget:
        tb = _round_up(tb // 2, row_align)

    tiles_per_slice = pl.cdiv(B, num_parallel * tb)
    # Largest valid block index along the batch dim; slices that run past the
    # end clamp to it (their rows are >= B, so the mask zeroes them out).
    max_blk = max(pl.cdiv(B, tb) - 1, 0)

    def in_map(c, i, nrows_ref):
        return (jnp.minimum(c * tiles_per_slice + i, max_blk), 0)

    def out_map(c, i, nrows_ref):
        return (c, 0)

    cost = pl.CostEstimate(
        flops=6 * B * C,
        transcendentals=B * C + B,
        bytes_accessed=B * C * (ip + it) + 4 * (num_parallel + 1),
    )

    nrows = jnp.array([B], dtype=jnp.int32)

    def _call(dim_semantics):
        return pl.pallas_call(
            _label_smoothing_loss_kernel,
            out_shape=jax.ShapeDtypeStruct((num_parallel, 1), jnp.float32),
            grid_spec=pltpu.PrefetchScalarGridSpec(
                num_scalar_prefetch=1,
                grid=(num_parallel, tiles_per_slice),
                in_specs=[
                    pl.BlockSpec((tb, C), in_map),
                    pl.BlockSpec((tb, C), in_map),
                ],
                out_specs=pl.BlockSpec((1, 1), out_map,
                                       memory_space=pltpu.SMEM),
                scratch_shapes=[pltpu.VMEM((1, 1), jnp.float32)],
            ),
            compiler_params=pltpu.CompilerParams(
                dimension_semantics=dim_semantics,
                vmem_limit_bytes=int(vmem_budget),
            ),
            cost_estimate=cost,
        )(nrows, pred, target)

    if num_parallel > 1:
        # v7x: request true per-TensorCore sharding of the leading axis; fall
        # back to plain "parallel" if CORE_PARALLEL is rejected.
        try:
            out = _call((pltpu.CORE_PARALLEL, pltpu.ARBITRARY))
        except Exception:
            out = _call((pltpu.PARALLEL, pltpu.ARBITRARY))
    else:
        out = _call((pltpu.ARBITRARY, pltpu.ARBITRARY))

    # Per-core partial sums -> global mean over the true batch size.
    return jnp.sum(out) / jnp.float32(B)


def _reference(pred, target):
    logp = jax.nn.log_softmax(pred.astype(jnp.float32), axis=-1)
    return jnp.mean(jnp.sum(-target.astype(jnp.float32) * logp, axis=-1))


if __name__ == "__main__":
    key = jax.random.PRNGKey(0)
    k1, k2, k3, k4, k5, k6 = jax.random.split(key, 6)

    # Case 1: small f32 inputs, batch divisible by the row alignment.
    B, C = 16, 128
    pred = jax.random.normal(k1, (B, C), dtype=jnp.float32)
    target = jax.nn.softmax(
        jax.random.normal(k2, (B, C), dtype=jnp.float32), axis=-1)
    loss = jax.block_until_ready(label_smoothing_loss(pred, target))
    ref = _reference(pred, target)
    assert jnp.allclose(loss, ref, rtol=1e-5, atol=1e-5), (loss, ref)

    # Case 2: ragged batch (exercises in-kernel tail masking) with bf16 inputs.
    B2, C2 = 24, 256
    pred2 = jax.random.normal(k3, (B2, C2), dtype=jnp.float32).astype(jnp.bfloat16)
    target2 = jax.nn.softmax(
        jax.random.normal(k4, (B2, C2), dtype=jnp.float32), axis=-1
    ).astype(jnp.bfloat16)
    loss2 = jax.block_until_ready(label_smoothing_loss(pred2, target2))
    ref2 = _reference(pred2, target2)
    assert jnp.allclose(loss2, ref2, rtol=1e-4, atol=1e-4), (loss2, ref2)

    # Case 3: batch not a multiple of the sublane alignment (8), f32.
    B3, C3 = 13, 128
    pred3 = jax.random.normal(k5, (B3, C3), dtype=jnp.float32)
    target3 = jax.nn.softmax(
        jax.random.normal(k6, (B3, C3), dtype=jnp.float32), axis=-1)
    loss3 = jax.block_until_ready(label_smoothing_loss(pred3, target3))
    ref3 = _reference(pred3, target3)
    assert jnp.allclose(loss3, ref3, rtol=1e-5, atol=1e-5), (loss3, ref3)

    print("KERNEL_OK")
</pallas_src>

<mosaic_0001>
module attributes {stable_mosaic.version = 11 : i64} {
  func.func @_label_smoothing_loss_kernel(%arg0: i32, %arg1: i32, %arg2: memref<1xi32, #tpu.memory_space<smem>>, %arg3: memref<16x128xf32, #tpu.memory_space<vmem>>, %arg4: memref<16x128xf32, #tpu.memory_space<vmem>>, %arg5: memref<1x1xf32, #tpu.memory_space<smem>>, %arg6: memref<1x1xf32, #tpu.memory_space<vmem>>) attributes {dimension_semantics = [#tpu.dimension_semantics<arbitrary>, #tpu.dimension_semantics<arbitrary>], iteration_bounds = array<i64: 1, 1>, scalar_prefetch = 1 : i64, scratch_operands = 1 : i64, tpu.core_type = #tpu.core_type<tc>, window_params = [{transform_indices = @transform_0, window_bounds = array<i64: 16, 128>}, {transform_indices = @transform_1, window_bounds = array<i64: 16, 128>}, {transform_indices = @transform_2, window_bounds = array<i64: 1, 1>}]} {
    %c0_i32 = arith.constant 0 : i32
    %0 = arith.cmpi eq, %arg1, %c0_i32 : i32
    %1 = arith.extui %0 : i1 to i32
    %c0_i32_0 = arith.constant 0 : i32
    %2 = arith.cmpi ne, %1, %c0_i32_0 : i32
    scf.if %2 {
      %cst_16 = arith.constant 0.000000e+00 : f32
      %40 = vector.broadcast %cst_16 : f32 to vector<1x1xf32>
      %c0_17 = arith.constant 0 : index
      %c0_18 = arith.constant 0 : index
      %41 = vector.load %arg6[%c0_17, %c0_18] : memref<1x1xf32, #tpu.memory_space<vmem>>, vector<1x1xf32>
      tpu.vector_store %arg6[%c0_17, %c0_18], %40 {strides = array<i32>} : memref<1x1xf32, #tpu.memory_space<vmem>>, vector<1x1xf32>,
    } else {
    }
    %c0 = arith.constant 0 : index
    %c0_1 = arith.constant 0 : index
    %3 = vector.load %arg3[%c0, %c0_1] : memref<16x128xf32, #tpu.memory_space<vmem>>, vector<16x128xf32>
    %c0_2 = arith.constant 0 : index
    %c0_3 = arith.constant 0 : index
    %4 = vector.load %arg4[%c0_2, %c0_3] : memref<16x128xf32, #tpu.memory_space<vmem>>, vector<16x128xf32>
    %cst = arith.constant dense<0xFF800000> : vector<16xf32>
    %5 = vector.multi_reduction <maximumf>, %3, %cst [1] : vector<16x128xf32> to vector<16xf32>
    %6 = vector.shape_cast %5 : vector<16xf32> to vector<16x1xf32>
    %7 = vector.broadcast %6 : vector<16x1xf32> to vector<16x128xf32>
    %8 = arith.subf %3, %7 : vector<16x128xf32>
    %9 = math.exp %8 : vector<16x128xf32>
    %cst_4 = arith.constant dense<0.000000e+00> : vector<16xf32>
    %10 = vector.multi_reduction <add>, %9, %cst_4 [1] : vector<16x128xf32> to vector<16xf32>
    %11 = vector.shape_cast %10 : vector<16xf32> to vector<16x1xf32>
    %12 = math.log %11 : vector<16x1xf32>
    %cst_5 = arith.constant dense<0.000000e+00> : vector<16xf32>
    %13 = vector.multi_reduction <add>, %4, %cst_5 [1] : vector<16x128xf32> to vector<16xf32>
    %14 = vector.shape_cast %13 : vector<16xf32> to vector<16x1xf32>
    %15 = arith.mulf %4, %3 : vector<16x128xf32>
    %cst_6 = arith.constant dense<0.000000e+00> : vector<16xf32>
    %16 = vector.multi_reduction <add>, %15, %cst_6 [1] : vector<16x128xf32> to vector<16xf32>
    %17 = vector.shape_cast %16 : vector<16xf32> to vector<16x1xf32>
    %18 = arith.addf %6, %12 : vector<16x1xf32>
    %19 = arith.mulf %18, %14 : vector<16x1xf32>
    %20 = arith.subf %19, %17 : vector<16x1xf32>
    %c1_i32 = arith.constant 1 : i32
    %21 = arith.muli %arg0, %c1_i32 : i32
    %22 = arith.addi %21, %arg1 : i32
    %c16_i32 = arith.constant 16 : i32
    %23 = arith.muli %22, %c16_i32 : i32
    %24 = tpu.iota {dimensions = array<i32: 0>} : vector<16x1xi32>
    %25 = vector.broadcast %23 : i32 to vector<16x1xi32>
    %26 = arith.addi %25, %24 : vector<16x1xi32>
    %c0_7 = arith.constant 0 : index
    %27 = memref.load %arg2[%c0_7] : memref<1xi32, #tpu.memory_space<smem>>
    %28 = vector.broadcast %27 : i32 to vector<16x1xi32>
    %29 = arith.cmpi slt, %26, %28 : vector<16x1xi32>
    %cst_8 = arith.constant 0.000000e+00 : f32
    %30 = vector.broadcast %cst_8 : f32 to vector<16x1xf32>
    %31 = arith.select %29, %20, %30 : vector<16x1xi1>, vector<16x1xf32>
    %c0_9 = arith.constant 0 : index
    %c0_10 = arith.constant 0 : index
    %32 = vector.load %arg6[%c0_9, %c0_10] : memref<1x1xf32, #tpu.memory_space<vmem>>, vector<1x1xf32>
    %cst_11 = arith.constant dense<0.000000e+00> : vector<1xf32>
    %33 = vector.multi_reduction <add>, %31, %cst_11 [0] : vector<16x1xf32> to vector<1xf32>
    %34 = vector.shape_cast %33 : vector<1xf32> to vector<1x1xf32>
    %35 = arith.addf %32, %34 : vector<1x1xf32>
    %c0_12 = arith.constant 0 : index
    %c0_13 = arith.constant 0 : index
    %36 = vector.load %arg6[%c0_12, %c0_13] : memref<1x1xf32, #tpu.memory_space<vmem>>, vector<1x1xf32>
    tpu.vector_store %arg6[%c0_12, %c0_13], %35 {strides = array<i32>} : memref<1x1xf32, #tpu.memory_space<vmem>>, vector<1x1xf32>,
    %c0_i32_14 = arith.constant 0 : i32
    %37 = arith.cmpi eq, %arg1, %c0_i32_14 : i32
    %38 = arith.extui %37 : i1 to i32
    %c0_i32_15 = arith.constant 0 : i32
    %39 = arith.cmpi ne, %38, %c0_i32_15 : i32
    scf.if %39 {
      %c0_16 = arith.constant 0 : index
      %c0_17 = arith.constant 0 : index
      %40 = vector.load %arg6[%c0_16, %c0_17] : memref<1x1xf32, #tpu.memory_space<vmem>>, vector<1x1xf32>
      %41 = vector.shape_cast %40 : vector<1x1xf32> to vector<1x1x1xf32>
      %cst_18 = arith.constant dense<0.000000e+00> : vector<1xf32>
      %42 = vector.multi_reduction <add>, %41, %cst_18 [1, 2] : vector<1x1x1xf32> to vector<1xf32>
      %43 = vector.shape_cast %42 : vector<1xf32> to vector<1x1x1xf32>
      %44 = vector.extract %43[0, 0, 0] : f32 from vector<1x1x1xf32>
      %c0_19 = arith.constant 0 : index
      %c0_20 = arith.constant 0 : index
      %45 = memref.load %arg5[%c0_19, %c0_20] : memref<1x1xf32, #tpu.memory_space<smem>>
      memref.store %44, %arg5[%c0_19, %c0_20] : memref<1x1xf32, #tpu.memory_space<smem>>
    } else {
    }
    return
  }
  func.func @transform_0(%arg0: i32, %arg1: i32, %arg2: memref<1xi32, #tpu.memory_space<smem>>) -> (i32, i32) {
    %c1_i32 = arith.constant 1 : i32
    %0 = arith.muli %arg0, %c1_i32 : i32
    %1 = arith.addi %0, %arg1 : i32
    %c0_i32 = arith.constant 0 : i32
    %2 = arith.minsi %1, %c0_i32 : i32
    %c0_i32_0 = arith.constant 0 : i32
    %c0_i32_1 = arith.constant 0 : i32
    return %2, %c0_i32_0 : i32, i32
  }
  func.func @transform_1(%arg0: i32, %arg1: i32, %arg2: memref<1xi32, #tpu.memory_space<smem>>) -> (i32, i32) {
    %c1_i32 = arith.constant 1 : i32
    %0 = arith.muli %arg0, %c1_i32 : i32
    %1 = arith.addi %0, %arg1 : i32
    %c0_i32 = arith.constant 0 : i32
    %2 = arith.minsi %1, %c0_i32 : i32
    %c0_i32_0 = arith.constant 0 : i32
    %c0_i32_1 = arith.constant 0 : i32
    return %2, %c0_i32_0 : i32, i32
  }
  func.func @transform_2(%arg0: i32, %arg1: i32, %arg2: memref<1xi32, #tpu.memory_space<smem>>) -> (i32, i32) {
    %c0_i32 = arith.constant 0 : i32
    %c0_i32_0 = arith.constant 0 : i32
    return %arg0, %c0_i32 : i32, i32
  }
}

</mosaic_0001>

<bundles_post_ra>
// kernel: tpu_custom_call.1
= control target key start
LH: loop header
LB: loop body
LE: loop exit
PB: predicated region body
PF: predicated region fallthrough
CT: control target
= control target key end

     0   :  { %9 = vsyncpa [#allocation6], 0  ;;  %s301_s0 = inlined_call_operand.<no memory space> [shape: s32[1], index: 0, kind: input, shape index: {}]   ;;  %s302_s1 = inlined_call_operand.hbm [shape: f32[16,128], index: 1, kind: input, shape index: {}]   ;;  %s303_s2 = inlined_call_operand.hbm [shape: f32[16,128], index: 2, kind: input, shape index: {}]   ;;  %s304_s3 = inlined_call_operand.hbm [shape: f32[1,1], index: 3, kind: output, shape index: {}]  }
   0x1   :  { %10 = vsyncpa [#allocation9], 0 }
   0x2   :  { %11 = vsyncpa [#allocation7], 0  ;;  %s234_s12 = smov [#allocation5]   ;;  %s174_s16 = scalar_lea.hbm %s302_s1, 256 }
   0x3   :  { %s23_s13 = sshll.u32 %s234_s12, 4  ;;  %p175_p0 = scmp.ne.s32.totalorder %s302_s1, %s174_s16  ;;  %s24_s13 = int_to_ptr.vmem [resolvable:$true] %s23_s13 }
   0x4   :  { %p178_p1 = scmp.lt.u32.totalorder %s174_s16, %s302_s1 }
   0x6   :  { %p180_p2 = pnand %p178_p1, %p175_p0 }
   0x8   :  { %183 = shalt.err (!%p180_p2)
}
   0x9   :  { %s184_s21 = scalar_lea.vmem %s24_s13, 256  ;;  %p189_p4 = scmp.lt.s32.totalorder %s24_s13, %s24_s13 }
   0xa   :  { %p185_p3 = scmp.ne.s32.totalorder %s24_s13, %s184_s21  ;;  %p190_p5 = scmp.lt.s32.totalorder %s184_s21, %s184_s21 }
   0xc   :  { %p191_p6 = por %p190_p5, %p189_p4 }
   0xe   :  { %p192_p7 = pnand %p191_p6, %p185_p3 }
  0x10   :  { %195 = shalt.err (!%p192_p7)
}
  0x11   :  { %s235_s22 = smov 128   ;;  %s236_s23 = smov 8  }
  0x12   :  { %29 = dma.hbm_to_vmem [thread:$0]  %s302_s1, 256, %s24_s13, [#allocation6], %s235_s22, %s235_s22, %s236_s23  }
  0x13   :  { %s237_s26 = smov [#allocation8]   ;;  %s196_s30 = scalar_lea.hbm %s303_s2, 256 }
  0x14   :  { %s41_s27 = sshll.u32 %s237_s26, 4  ;;  %p197_p8 = scmp.ne.s32.totalorder %s303_s2, %s196_s30  ;;  %s42_s27 = int_to_ptr.vmem [resolvable:$true] %s41_s27 }
  0x15   :  { %p200_p9 = scmp.lt.u32.totalorder %s196_s30, %s303_s2 }
  0x17   :  { %p202_p10 = pnand %p200_p9, %p197_p8 }
  0x19   :  { %205 = shalt.err (!%p202_p10)
}
  0x1a   :  { %s206_s8 = scalar_lea.vmem %s42_s27, 256  ;;  %p211_p12 = scmp.lt.s32.totalorder %s42_s27, %s42_s27 }
  0x1b   :  { %p207_p11 = scmp.ne.s32.totalorder %s42_s27, %s206_s8  ;;  %p212_p13 = scmp.lt.s32.totalorder %s206_s8, %s206_s8 }
  0x1d   :  { %p213_p0 = por %p212_p13, %p211_p12 }
  0x1f   :  { %p214_p1 = pnand %p213_p0, %p207_p11 }
  0x21   :  { %217 = shalt.err (!%p214_p1)
}
  0x22   :  { %47 = dma.hbm_to_vmem [thread:$0]  %s303_s2, 256, %s42_s27, [#allocation9], %s235_s22, %s235_s22, %s236_s23  }
  0x23   :  { %228 = dma.done.wait [#allocation6], 256  }
  0x24   :  { %229 = vsyncadd [#allocation6], 4294967040 }
  0x25   :  { %230 = dma.done.wait [#allocation9], 256  }
  0x26   :  { %231 = vsyncadd [#allocation9], 4294967040  ;;  %vm66_vm0 = vcmask 0   ;;  %v238_v0 = vmov 0.0   ;;  %v68_v1 = vld [vmem:[#allocation5] sm:$0xff]  ;;  %v69_v2 = vld [vmem:[#allocation5 + $0x8] sm:$0xff]  ;;  %v108_v19 = vlaneseq  ;;  %v115_v30 = vstv %s301_s0 }
  0x27   :  { %67 = vst.msk [vmem:[#allocation2] sm:$0x1] %vm66_vm0, %v238_v0  ;;  %72 = vmax.xlane.f32.xlu0 %v68_v1  ;;  %v70_v3 = vld [vmem:[#allocation8] sm:$0xff]  ;;  %v71_v13 = vld [vmem:[#allocation8 + $0x8] sm:$0xff]  ;;  %s218_s13 = scalar_lea.hbm %s304_s3, 16 }
  0x28   :  { %v94_v4 = vmul.f32 %v70_v3, %v68_v1  ;;  %v95_v14 = vmul.f32 %v71_v13, %v69_v2  ;;  %v109_v24 = vshrl.u32 %v108_v19, 7  ;;  %p219_p2 = scmp.ne.s32.totalorder %s304_s3, %s218_s13  ;;  %p222_p3 = scmp.lt.u32.totalorder %s218_s13, %s304_s3 }
  0x2a   :  { %v110_v28 = vadd.s32 8, %v109_v24  ;;  %vm116_vm1 = vcmp.lt.s32.totalorder %v109_v24, %v115_v30  ;;  %p224_p4 = pnand %p222_p3, %p219_p2 }
  0x2b   :  { %74 = vmax.xlane.f32.xlu0 %v69_v2 }
  0x2c   :  { %vm117_vm2 = vcmp.lt.s32.totalorder %v110_v28, %v115_v30 }
  0x2e   :  { %v120_v43 = vld [vmem:[#allocation2] sm:$0x1] }
  0x2f   :  { %90 = vadd.xlane.f32.xlu0 %v70_v3 }
  0x33   :  { %96 = vadd.xlane.f32.xlu0 %v94_v4 }
  0xb4   :  { %v73_v5 = vpop.xlane.xlu0 %72 }
  0xb5   :  { %v76_v6 = vsub.f32 %v68_v1, %v73_v5 }
  0xb7   :  { %v78_v7 = vmul.f32 1.442695, %v76_v6 }
  0xb8   :  { %v75_v8 = vpop.xlane.xlu0 %74 }
  0xb9   :  { %v77_v9 = vsub.f32 %v69_v2, %v75_v8  ;;  %166 = vpow2.f32 %v78_v7 }
  0xbb   :  { %v80_v10 = vmul.f32 1.442695, %v77_v9 }
  0xbc   :  { %v91_v18 = vpop.xlane.xlu0 %90 }
  0xbd   :  { %168 = vpow2.f32 %v80_v10 }
  0xc0   :  { %v97_v27 = vpop.xlane.xlu0 %96 }
  0xc3   :  { %v167_v11 = vpop.eup %166 }
  0xc4   :  { %82 = vadd.xlane.f32.xlu1 %v167_v11 }
  0xc7   :  { %v169_v12 = vpop.eup %168 }
  0xc8   :  { %84 = vadd.xlane.f32.xlu1 %v169_v12 }
  0xcc   :  { %92 = vadd.xlane.f32.xlu1 %v71_v13 }
  0xd0   :  { %98 = vadd.xlane.f32.xlu1 %v95_v14 }
 0x151   :  { %v83_v15 = vpop.xlane.xlu1 %82 }
 0x152   :  { %170 = vlog2.f32 %v83_v15 }
 0x155   :  { %v85_v16 = vpop.xlane.xlu1 %84 }
 0x156   :  { %172 = vlog2.f32 %v85_v16 }
 0x159   :  { %v93_v21 = vpop.xlane.xlu1 %92 }
 0x15c   :  { %v171_v17 = vpop.eup %170 }
 0x15d   :  { %v87_v20 = vmul.f32 0.6931472, %v171_v17  ;;  %v99_v31 = vpop.xlane.xlu1 %98 }
 0x15f   :  { %v100_v22 = vadd.f32 %v87_v20, %v73_v5 }
 0x160   :  { %v173_v23 = vpop.eup %172 }
 0x161   :  { %v89_v25 = vmul.f32 0.6931472, %v173_v23  ;;  %v102_v26 = vmul.f32 %v100_v22, %v91_v18 }
 0x163   :  { %v101_v29 = vadd.f32 %v89_v25, %v75_v8  ;;  %v104_v33 = vsub.f32 %v102_v26, %v97_v27 }
 0x165   :  { %v103_v32 = vmul.f32 %v101_v29, %v93_v21  ;;  %v118_v35 = vsel %vm116_vm1, %v104_v33, 0.0 }
 0x167   :  { %v105_v34 = vsub.f32 %v103_v32, %v99_v31 }
 0x169   :  { %v119_v36 = vsel %vm117_vm2, %v105_v34, 0.0 }
 0x16a   :  { %v121_v37 = vadd.f32 %v119_v36, %v118_v35 }
 0x16c   :  { %v122_v38 = vrot.slane %v121_v37, 4 }
 0x16e   :  { %v123_v39 = vadd.f32 %v122_v38, %v121_v37 }
 0x170   :  { %v124_v40 = vrot.slane %v123_v39, 2 }
 0x172   :  { %v125_v41 = vadd.f32 %v124_v40, %v123_v39 }
 0x174   :  { %v126_v42 = vrot.slane %v125_v41, 1 }
 0x176   :  { %v127_v44 = vadd.f32 %v126_v42, %v125_v41 }
 0x178   :  { %v128_v45 = vadd.f32 %v127_v44, %v120_v43 }
 0x17a   :  { %130 = vst.msk [vmem:[#allocation2] sm:$0x1] %vm66_vm0, %v128_v45 }
 0x181   :  { %v134_v46 = vld [vmem:[#allocation2] sm:$0x1] }
 0x182   :  { %158 = vpush %v134_v46 }
 0x1b3   :  { %s159_s0 = spop %158 }
 0x1b4   :  { %138 = sst [smem:[#allocation10]] %s159_s0 }
 0x1b5   :  { %227 = shalt.err (!%p224_p4)
}
 0x1b6   :  { %s239_s18 = smov [#allocation10]  }
 0x1b7   :  { %146 = dma.smem_to_hbm %s239_s18, 16, %s304_s3, [#allocation7]  }
 0x1b8   :  { %232 = dma.done.wait [#allocation7], 16  }
 0x1b9   :  { %233 = vsyncadd [#allocation7], 4294967280 }
 0x1ba   :  { %150 = sfence }
 0x1bb   :  { %151 = vsyncpa [#allocation6], 1 }
 0x1bc   :  { %152 = vsyncpa [#allocation9], 1 }
 0x1bd   :  { %153 = vsyncpa [#allocation7], 1 }

</bundles_post_ra>
